<compile_context>
chip_gen: v5e
topology: v5e:2x2
jax: 0.10.0
libtpu: 0.0.40
codegen_flags: <defaults>
</compile_context>

<pallas_src>
import functools
import math

import jax
import jax.numpy as jnp
from jax.experimental import pallas as pl
from jax.experimental.pallas import tpu as pltpu

_MIB = 1024 * 1024


def _vmem_capacity_bytes():
    """Physical VMEM per TensorCore; conservative fallback if the query fails."""
    try:
        info = pltpu.get_tpu_info()
        cap = int(getattr(info, "vmem_capacity_bytes", 0) or 0)
        if cap > 0:
            return cap
    except Exception:
        pass
    return 64 * _MIB  # v7x per-TC size; safe lower bound for v5e/v6e as well


def _round_mib(nbytes):
    return ((int(nbytes) + _MIB - 1) // _MIB) * _MIB


# ---------------------------------------------------------------------------
# Path A: VMEM-resident LUT, gather via one-hot MXU matmul.
# ---------------------------------------------------------------------------
def _embed_onehot_kernel(idx_ref, lut_ref, out_ref, *, scale):
    # idx_ref: (T, 1) int32 token ids for this block (VMEM).
    # lut_ref: (vocab, d_model) VMEM-resident table (same block every step).
    # out_ref: (T, d_model) output tile.
    tpb = idx_ref.shape[0]
    vocab = lut_ref.shape[0]
    ids = idx_ref[...]                                               # (T, 1)
    vocab_iota = jax.lax.broadcasted_iota(jnp.int32, (tpb, vocab), 1)
    # One-hot built directly in the table dtype (bf16 table -> bf16 one-hot,
    # exact for 0/1 values); accumulate in f32 on the MXU.
    one_hot = (ids == vocab_iota).astype(lut_ref.dtype)              # (T, vocab)
    gathered = jnp.dot(one_hot, lut_ref[...],
                       preferred_element_type=jnp.float32)           # (T, d_model)
    out_ref[...] = (gathered * scale).astype(out_ref.dtype)


# ---------------------------------------------------------------------------
# Path A': VMEM-resident LUT, vocab-independent per-token loop gather.
# (Used for medium vocab where the (T, vocab) one-hot would dominate.)
# ---------------------------------------------------------------------------
def _embed_vmem_gather_kernel(idx_ref, lut_ref, out_ref, *,
                              tokens_per_block, scale):
    # idx_ref: (n_pad,) int32 ids, scalar-prefetched into SMEM.
    # lut_ref: (vocab, d_model) VMEM-resident table.
    base = pl.program_id(0) * tokens_per_block

    def body(t, carry):
        row = idx_ref[base + t]
        out_ref[pl.ds(t, 1), :] = (
            lut_ref[pl.ds(row, 1), :].astype(jnp.float32) * scale
        ).astype(out_ref.dtype)
        return carry

    jax.lax.fori_loop(0, tokens_per_block, body, 0, unroll=8)


# ---------------------------------------------------------------------------
# Path B: large LUT stays in HBM; chunked double-buffered row-DMA gather with
# consolidated per-chunk semaphore waits.
# ---------------------------------------------------------------------------
def _embed_dma_kernel(idx_ref, lut_hbm, out_ref, rows_vmem, sems, *,
                      tokens_per_block, chunk, scale):
    # idx_ref:   (n_pad,) int32 ids in SMEM (scalar-prefetched).
    # lut_hbm:   (vocab, d_model) ref left in HBM (memory_space=pl.ANY).
    # rows_vmem: (2, chunk, d_model) double-buffered gather scratch.
    # sems:      (2,) DMA semaphores (one per slot; all row copies of a chunk
    #            signal the same semaphore).
    base = pl.program_id(0) * tokens_per_block
    n_chunks = tokens_per_block // chunk

    def issue(c, slot):
        cbase = base + c * chunk

        def body(t, carry):
            row = idx_ref[cbase + t]
            pltpu.make_async_copy(
                lut_hbm.at[pl.ds(row, 1), :],
                rows_vmem.at[slot, pl.ds(t, 1), :],
                sems.at[slot],
            ).start()
            return carry

        # Unrolled so the LLO scheduler can pipeline SMEM reads with the
        # DMA-descriptor pushes (issue phase is scalar / vector-misc bound).
        jax.lax.fori_loop(0, chunk, body, 0, unroll=8)

    def wait(slot):
        # One consolidated wait: the descriptor covers the full (chunk, d_model)
        # slot buffer, i.e. exactly the total bytes of the `chunk` row copies
        # that signaled sems[slot].  No SMEM reads follow the wait.
        pltpu.make_async_copy(
            lut_hbm.at[pl.ds(0, chunk), :],
            rows_vmem.at[slot],
            sems.at[slot],
        ).wait()

    # Prime chunk 0, then: issue chunk c+1, wait chunk c, scale + store.
    issue(0, 0)

    def step(c, carry):
        slot = jax.lax.rem(c, 2)

        @pl.when(c + 1 < n_chunks)
        def _():
            issue(c + 1, 1 - slot)

        wait(slot)
        off = pl.multiple_of(c * chunk, chunk)
        out_ref[pl.ds(off, chunk), :] = (
            rows_vmem[slot].astype(jnp.float32) * scale
        ).astype(out_ref.dtype)
        return carry

    jax.lax.fori_loop(0, n_chunks, step, 0)


# ---------------------------------------------------------------------------
# Wrapper
# ---------------------------------------------------------------------------
def embeddings_forward(x, lut, *, tokens_per_block=None,
                       onehot_max_vocab=2048, dma_chunk=64):
    """x: (B, S) integer token ids; lut: (vocab, d_model). Returns (B, S, d_model)."""
    B, S = x.shape
    vocab, d_model = lut.shape
    n = B * S
    scale = float(math.sqrt(d_model))

    cap = _vmem_capacity_bytes()
    # Generation-aware residency budget: ~48 MiB on 128 MiB-VMEM parts
    # (v5e/v6e), ~24 MiB on 64 MiB-per-TC parts (v7x).
    resident_budget = (cap * 3) // 8

    table_bytes = lut.size * lut.dtype.itemsize
    out_itemsize = lut.dtype.itemsize

    # Token-block size: multiple of 8 (sublane-dense); bigger on big-VMEM chips.
    if tokens_per_block is None:
        tokens_per_block = 512 if cap >= 96 * _MIB else 256
    tpb = tokens_per_block
    while tpb > 8 and 2 * tpb * d_model * out_itemsize > cap // 4:
        tpb //= 2
    tpb = max(8, (tpb // 8) * 8)
    if n < tpb:
        tpb = max(8, ((n + 7) // 8) * 8)
    n_pad = ((n + tpb - 1) // tpb) * tpb
    num_blocks = n_pad // tpb

    # Clamp ids so out-of-range / padded ids can never cause an OOB HBM DMA.
    idx = jnp.clip(x.reshape(n).astype(jnp.int32), 0, vocab - 1)
    if n_pad != n:
        idx = jnp.pad(idx, (0, n_pad - n))  # pad rows gather row 0, sliced off below

    out_shape = jax.ShapeDtypeStruct((n_pad, d_model), lut.dtype)
    resident = table_bytes <= resident_budget

    def _limit(nbytes):
        return int(min(max(_round_mib(nbytes), 16 * _MIB), cap))

    if resident and vocab <= onehot_max_vocab:
        # ---------------- Path A: one-hot MXU gather ----------------
        def _call_onehot(single_buffer_lut):
            spec_kwargs = {}
            if single_buffer_lut:
                # Constant index_map -> same block every step; a single buffer
                # halves the resident-table VMEM footprint.
                spec_kwargs["pipeline_mode"] = pl.Buffered(1)
            lut_spec = pl.BlockSpec((vocab, d_model), lambda i: (0, 0),
                                    **spec_kwargs)
            lut_bufs = 1 if single_buffer_lut else 2
            vmem_bytes = (table_bytes * lut_bufs
                          + 2 * tpb * d_model * out_itemsize   # out (double-buffered)
                          + 2 * tpb * 4                        # ids
                          + tpb * vocab * 4                    # one-hot intermediate
                          + 4 * _MIB)                          # headroom
            return pl.pallas_call(
                functools.partial(_embed_onehot_kernel, scale=scale),
                out_shape=out_shape,
                grid_spec=pltpu.PrefetchScalarGridSpec(
                    num_scalar_prefetch=0,
                    grid=(num_blocks,),
                    in_specs=[pl.BlockSpec((tpb, 1), lambda i: (i, 0)),
                              lut_spec],
                    out_specs=pl.BlockSpec((tpb, d_model), lambda i: (i, 0)),
                ),
                compiler_params=pltpu.CompilerParams(
                    dimension_semantics=("parallel",),
                    vmem_limit_bytes=_limit(vmem_bytes)),
            )(idx.reshape(n_pad, 1), lut)

        try:
            out = _call_onehot(True)
        except Exception:
            # pipeline_mode=pl.Buffered(1) unsupported on this jax/Mosaic
            # version: fall back to the default double-buffered constant block.
            out = _call_onehot(False)

    elif resident:
        # ------------- Path A': resident-LUT loop gather -------------
        def _call_gather(single_buffer_lut):
            spec_kwargs = {}
            if single_buffer_lut:
                spec_kwargs["pipeline_mode"] = pl.Buffered(1)
            lut_spec = pl.BlockSpec((vocab, d_model), lambda i, ids: (0, 0),
                                    **spec_kwargs)
            lut_bufs = 1 if single_buffer_lut else 2
            vmem_bytes = (table_bytes * lut_bufs
                          + 2 * tpb * d_model * out_itemsize
                          + 4 * _MIB)
            return pl.pallas_call(
                functools.partial(_embed_vmem_gather_kernel,
                                  tokens_per_block=tpb, scale=scale),
                out_shape=out_shape,
                grid_spec=pltpu.PrefetchScalarGridSpec(
                    num_scalar_prefetch=1,            # ids -> SMEM
                    grid=(num_blocks,),
                    in_specs=[lut_spec],
                    out_specs=pl.BlockSpec((tpb, d_model), lambda i, ids: (i, 0)),
                ),
                compiler_params=pltpu.CompilerParams(
                    dimension_semantics=("parallel",),
                    vmem_limit_bytes=_limit(vmem_bytes)),
            )(idx, lut)

        try:
            out = _call_gather(True)
        except Exception:
            out = _call_gather(False)

    else:
        # ---------------- Path B: HBM row-DMA gather ----------------
        chunk = dma_chunk
        if tpb % chunk != 0:
            chunk = math.gcd(tpb, chunk)
        chunk = max(1, min(chunk, tpb))
        vmem_bytes = (2 * chunk * d_model * lut.dtype.itemsize   # gather scratch
                      + 2 * tpb * d_model * out_itemsize         # out (double-buffered)
                      + 4 * _MIB)
        out = pl.pallas_call(
            functools.partial(_embed_dma_kernel, tokens_per_block=tpb,
                              chunk=chunk, scale=scale),
            out_shape=out_shape,
            grid_spec=pltpu.PrefetchScalarGridSpec(
                num_scalar_prefetch=1,                          # ids -> SMEM
                grid=(num_blocks,),
                in_specs=[pl.BlockSpec(memory_space=pl.ANY)],   # LUT stays in HBM
                out_specs=pl.BlockSpec((tpb, d_model), lambda i, ids: (i, 0)),
                scratch_shapes=[
                    pltpu.VMEM((2, chunk, d_model), lut.dtype),
                    pltpu.SemaphoreType.DMA((2,)),
                ],
            ),
            compiler_params=pltpu.CompilerParams(
                dimension_semantics=("parallel",),   # blocks independent -> v7x 2-TC
                vmem_limit_bytes=_limit(vmem_bytes)),
        )(idx, lut)

    return out[:n].reshape(B, S, d_model)


if __name__ == "__main__":
    # Small shapes consistent with the module's forward:
    #   x: (batch=2, seq=8) integer token ids, vocab=64, d_model=32.
    B, S = 2, 8
    vocab, d_model = 64, 32

    key = jax.random.PRNGKey(0)
    k_lut, k_idx = jax.random.split(key)

    # Deterministic synthetic parameters (nn.Embedding weight: (vocab, d_model)).
    lut = jax.random.normal(k_lut, (vocab, d_model), dtype=jnp.float32)
    x = jax.random.randint(k_idx, (B, S), 0, vocab, dtype=jnp.int32)

    out = embeddings_forward(x, lut)
    out = jax.block_until_ready(out)

    # Reference check (plain JAX) to validate semantics.
    ref = lut[x] * math.sqrt(d_model)
    assert out.shape == (B, S, d_model)
    assert out.dtype == lut.dtype
    assert jnp.allclose(out, ref, atol=1e-5, rtol=1e-5)

    print("KERNEL_OK")
</pallas_src>

<mosaic_0001>
module attributes {stable_mosaic.version = 11 : i64} {
  func.func @_embed_onehot_kernel(%arg0: i32, %arg1: memref<16x1xi32, #tpu.memory_space<vmem>>, %arg2: memref<64x32xf32, #tpu.memory_space<vmem>>, %arg3: memref<16x32xf32, #tpu.memory_space<vmem>>) attributes {dimension_semantics = [#tpu.dimension_semantics<parallel>], iteration_bounds = array<i64: 1>, scalar_prefetch = 0 : i64, scratch_operands = 0 : i64, tpu.core_type = #tpu.core_type<tc>, window_params = [{transform_indices = @transform_0, window_bounds = array<i64: 16, 1>}, {pipeline_mode = #tpu.pipeline_mode<synchronous>, transform_indices = @transform_1, window_bounds = array<i64: 64, 32>}, {transform_indices = @transform_2, window_bounds = array<i64: 16, 32>}]} {
    %c0 = arith.constant 0 : index
    %c0_0 = arith.constant 0 : index
    %0 = vector.load %arg1[%c0, %c0_0] : memref<16x1xi32, #tpu.memory_space<vmem>>, vector<16x1xi32>
    %1 = tpu.iota {dimensions = array<i32: 1>} : vector<16x64xi32>
    %2 = vector.broadcast %0 : vector<16x1xi32> to vector<16x64xi32>
    %3 = arith.cmpi eq, %2, %1 : vector<16x64xi32>
    %4 = arith.extui %3 : vector<16x64xi1> to vector<16x64xi32>
    %5 = arith.sitofp %4 : vector<16x64xi32> to vector<16x64xf32>
    %c0_1 = arith.constant 0 : index
    %c0_2 = arith.constant 0 : index
    %6 = vector.load %arg2[%c0_1, %c0_2] : memref<64x32xf32, #tpu.memory_space<vmem>>, vector<64x32xf32>
    %cst = arith.constant dense<0.000000e+00> : vector<16x32xf32>
    %7 = tpu.matmul %5, %6, %cst {dimension_numbers = #tpu.dot_dimension_numbers<[1], [0], [0], [1], [0, 0, 1, 1], [], []>} : vector<16x64xf32>, vector<64x32xf32>, vector<16x32xf32> -> vector<16x32xf32>
    %cst_3 = arith.constant 5.65685415 : f32
    %8 = vector.broadcast %cst_3 : f32 to vector<16x32xf32>
    %9 = arith.mulf %7, %8 : vector<16x32xf32>
    %c0_4 = arith.constant 0 : index
    %c0_5 = arith.constant 0 : index
    %10 = vector.load %arg3[%c0_4, %c0_5] : memref<16x32xf32, #tpu.memory_space<vmem>>, vector<16x32xf32>
    tpu.vector_store %arg3[%c0_4, %c0_5], %9 {strides = array<i32>} : memref<16x32xf32, #tpu.memory_space<vmem>>, vector<16x32xf32>,
    return
  }
  func.func @transform_0(%arg0: i32) -> (i32, i32) {
    %c0_i32 = arith.constant 0 : i32
    %c0_i32_0 = arith.constant 0 : i32
    return %arg0, %c0_i32 : i32, i32
  }
  func.func @transform_1(%arg0: i32) -> (i32, i32) {
    %c0_i32 = arith.constant 0 : i32
    %c0_i32_0 = arith.constant 0 : i32
    %c0_i32_1 = arith.constant 0 : i32
    return %c0_i32, %c0_i32_0 : i32, i32
  }
  func.func @transform_2(%arg0: i32) -> (i32, i32) {
    %c0_i32 = arith.constant 0 : i32
    %c0_i32_0 = arith.constant 0 : i32
    return %arg0, %c0_i32 : i32, i32
  }
}

module attributes {stable_mosaic.version = 11 : i64} {
  func.func @_embed_onehot_kernel(%arg0: i32, %arg1: memref<16x1xi32, #tpu.memory_space<vmem>>, %arg2: memref<64x32xf32, #tpu.memory_space<vmem>>, %arg3: memref<16x32xf32, #tpu.memory_space<vmem>>) attributes {dimension_semantics = [#tpu.dimension_semantics<parallel>], iteration_bounds = array<i64: 1>, scalar_prefetch = 0 : i64, scratch_operands = 0 : i64, tpu.core_type = #tpu.core_type<tc>, window_params = [{transform_indices = @transform_0, window_bounds = array<i64: 16, 1>}, {pipeline_mode = #tpu.pipeline_mode<synchronous>, transform_indices = @transform_1, window_bounds = array<i64: 64, 32>}, {transform_indices = @transform_2, window_bounds = array<i64: 16, 32>}]} {
    %c0 = arith.constant 0 : index
    %c0_0 = arith.constant 0 : index
    %0 = vector.load %arg1[%c0, %c0_0] : memref<16x1xi32, #tpu.memory_space<vmem>>, vector<16x1xi32>
    %1 = tpu.iota {dimensions = array<i32: 1>} : vector<16x64xi32>
    %2 = vector.broadcast %0 : vector<16x1xi32> to vector<16x64xi32>
    %3 = arith.cmpi eq, %2, %1 : vector<16x64xi32>
    %4 = arith.extui %3 : vector<16x64xi1> to vector<16x64xi32>
    %5 = arith.sitofp %4 : vector<16x64xi32> to vector<16x64xf32>
    %c0_1 = arith.constant 0 : index
    %c0_2 = arith.constant 0 : index
    %6 = vector.load %arg2[%c0_1, %c0_2] : memref<64x32xf32, #tpu.memory_space<vmem>>, vector<64x32xf32>
    %cst = arith.constant dense<0.000000e+00> : vector<16x32xf32>
    %7 = tpu.matmul %5, %6, %cst {dimension_numbers = #tpu.dot_dimension_numbers<[1], [0], [0], [1], [0, 0, 1, 1], [], []>} : vector<16x64xf32>, vector<64x32xf32>, vector<16x32xf32> -> vector<16x32xf32>
    %cst_3 = arith.constant 5.65685415 : f32
    %8 = vector.broadcast %cst_3 : f32 to vector<16x32xf32>
    %9 = arith.mulf %7, %8 : vector<16x32xf32>
    %c0_4 = arith.constant 0 : index
    %c0_5 = arith.constant 0 : index
    %10 = vector.load %arg3[%c0_4, %c0_5] : memref<16x32xf32, #tpu.memory_space<vmem>>, vector<16x32xf32>
    tpu.vector_store %arg3[%c0_4, %c0_5], %9 {strides = array<i32>} : memref<16x32xf32, #tpu.memory_space<vmem>>, vector<16x32xf32>,
    return
  }
  func.func @transform_0(%arg0: i32) -> (i32, i32) {
    %c0_i32 = arith.constant 0 : i32
    %c0_i32_0 = arith.constant 0 : i32
    return %arg0, %c0_i32 : i32, i32
  }
  func.func @transform_1(%arg0: i32) -> (i32, i32) {
    %c0_i32 = arith.constant 0 : i32
    %c0_i32_0 = arith.constant 0 : i32
    %c0_i32_1 = arith.constant 0 : i32
    return %c0_i32, %c0_i32_0 : i32, i32
  }
  func.func @transform_2(%arg0: i32) -> (i32, i32) {
    %c0_i32 = arith.constant 0 : i32
    %c0_i32_0 = arith.constant 0 : i32
    return %arg0, %c0_i32 : i32, i32
  }
}

</mosaic_0001>

<bundles_post_ra>
// kernel: tpu_custom_call.1
= control target key start
LH: loop header
LB: loop body
LE: loop exit
PB: predicated region body
PF: predicated region fallthrough
CT: control target
= control target key end

     0   :  { %v133_v2 = vmov 0   ;;  %s186_s0 = inlined_call_operand.vmem [shape: s32[16,1], index: 0, kind: input, shape index: {}]   ;;  %s187_s1 = inlined_call_operand.vmem [shape: f32[64,32], index: 1, kind: input, shape index: {}]   ;;  %s188_s2 = inlined_call_operand.hbm [shape: f32[16,32], index: 2, kind: output, shape index: {}]  }
   0x1   :  { %v12_v0 = vld [vmem:[%s186_s0] sm:$0xff]  ;;  %v35_v1 = vld [vmem:[%s187_s1 + $0x38] sm:$0xff]  ;;  %106 = vset.pattern.permute.xlu0 %v133_v2  ;;  %v34_v3 = vld [vmem:[%s187_s1 + $0x30] sm:$0xff] }
   0x2   :  { %51 = vmatpush.msra.mxu0 %v35_v1  ;;  %17 = vperm.xlu0 %106, %v12_v0   ;;  %v33_v4 = vld [vmem:[%s187_s1 + $0x28] sm:$0xff] }
   0x3   :  { %93 = vmatpush.msra.mxu1 %v35_v1 }
   0x4   :  { %52 = vmatpush.msra.mxu0 %v34_v3 }
   0x5   :  { %7 = vsyncpa [#allocation3], 0  ;;  %v32_v5 = vld [vmem:[%s187_s1 + $0x20] sm:$0xff]  ;;  %94 = vmatpush.msra.mxu1 %v34_v3  ;;  %v31_v6 = vld [vmem:[%s187_s1 + $0x18] sm:$0xff]  ;;  %v14_v11 = vlaneseq  ;;  %vm36_vm0 = vcmask 523264   ;;  %v134_v14 = vmov 0.0  }
   0x6   :  { %53 = vmatpush.msra.mxu0 %v33_v4  ;;  %v13_v7 = vld [vmem:[%s186_s0 + $0x8] sm:$0xff]  ;;  %v30_v8 = vld [vmem:[%s187_s1 + $0x10] sm:$0xff]  ;;  %v28_v10 = vld [vmem:[%s187_s1] sm:$0xff]  ;;  %vm68_vm3 = vcmask 261120   ;;  %s135_s0 = smov [#allocation2]   ;;  %s77_s3 = sshll.u32 %s188_s2, 4  ;;  %s78_s3 = int_to_ptr.hbm [resolvable:$true] %s77_s3 }
   0x7   :  { %95 = vmatpush.msra.mxu1 %v33_v4  ;;  %v29_v9 = vld [vmem:[%s187_s1 + $0x8] sm:$0xff]  ;;  %v15_v12 = vand.u32 127, %v14_v11  ;;  %s75_s1 = sshll.u32 %s135_s0, 4  ;;  %s136_s4 = smov 128   ;;  %s76_s1 = int_to_ptr.vmem [resolvable:$true] %s75_s1 }
   0x8   :  { %54 = vmatpush.msra.mxu0 %v32_v5  ;;  %s137_s5 = smov 8  }
   0x9   :  { %96 = vmatpush.msra.mxu1 %v32_v5 }
   0xa   :  { %55 = vmatpush.msra.mxu0 %v31_v6  ;;  %20 = vperm.xlu0 %106, %v13_v7  }
   0xb   :  { %97 = vmatpush.msra.mxu1 %v31_v6 }
   0xc   :  { %56 = vmatpush.msra.mxu0 %v30_v8 }
   0xd   :  { %98 = vmatpush.msra.mxu1 %v30_v8 }
   0xe   :  { %57 = vmatpush.msra.mxu0 %v29_v9 }
   0xf   :  { %99 = vmatpush.msra.mxu1 %v29_v9 }
  0x10   :  { %58 = vmatpush.msra.mxu0 %v28_v10 }
  0x11   :  { %100 = vmatpush.msra.mxu1 %v28_v10 }
  0x74   :  { %v18_v13 = vpop.permute.xlu0 %17 }
  0x75   :  { %vm22_vm1 = vcmp.eq.s32.totalorder %v18_v13, %v15_v12 }
  0x76   :  { %v89_v15 = vsel %vm22_vm1, 1.0, %v134_v14 }
  0x77   :  { %91 = vmatmul.msk.f32.vlgmr.msra.gmra.mxu0 %vm36_vm0, %v89_v15 }
  0x7c   :  { %v21_v16 = vpop.permute.xlu0 %20 }
  0x7d   :  { %vm23_vm2 = vcmp.eq.s32.totalorder %v21_v16, %v15_v12 }
  0x7e   :  { %v90_v17 = vsel %vm23_vm2, 1.0, %v134_v14 }
  0x7f   :  { %92 = vmatmul.msk.f32.vlgmr.msra.gmra.mxu1 %vm36_vm0, %v90_v17 }
  0xf4   :  { %v60_v18 = vpop.f32.mrf.mxu0 }
  0xf5   :  { %v66_v19 = vmul.f32 5.656854, %v60_v18 }
  0xf7   :  { %69 = vst.msk [vmem:[#allocation2] sm:$0xff] %vm68_vm3, %v66_v19 }
  0xfc   :  { %v63_v20 = vpop.f32.mrf.mxu1 }
  0xfd   :  { %v67_v21 = vmul.f32 5.656854, %v63_v20 }
  0xff   :  { %70 = vst.msk [vmem:[#allocation2 + $0x8] sm:$0xff] %vm68_vm3, %v67_v21 }
 0x100   :  { %83 = dma.vmem_to_hbm [thread:$0]  %s76_s1, 256, %s78_s3, [#allocation3], %s136_s4, %s136_s4, %s137_s5  }
 0x101   :  { %131 = dma.done.wait [#allocation3], 256  }
 0x102   :  { %132 = vsyncadd [#allocation3], 4294967040 }
 0x103   :  { %88 = vsyncpa [#allocation3], 1 }

// kernel: tpu_custom_call.1
= control target key start
LH: loop header
LB: loop body
LE: loop exit
PB: predicated region body
PF: predicated region fallthrough
CT: control target
= control target key end

     0   :  { %v133_v2 = vmov 0   ;;  %s186_s0 = inlined_call_operand.vmem [shape: s32[16,1], index: 0, kind: input, shape index: {}]   ;;  %s187_s1 = inlined_call_operand.vmem [shape: f32[64,32], index: 1, kind: input, shape index: {}]   ;;  %s188_s2 = inlined_call_operand.hbm [shape: f32[16,32], index: 2, kind: output, shape index: {}]  }
   0x1   :  { %v12_v0 = vld [vmem:[%s186_s0] sm:$0xff]  ;;  %v35_v1 = vld [vmem:[%s187_s1 + $0x38] sm:$0xff]  ;;  %106 = vset.pattern.permute.xlu0 %v133_v2  ;;  %v34_v3 = vld [vmem:[%s187_s1 + $0x30] sm:$0xff] }
   0x2   :  { %51 = vmatpush.msra.mxu0 %v35_v1  ;;  %17 = vperm.xlu0 %106, %v12_v0   ;;  %v33_v4 = vld [vmem:[%s187_s1 + $0x28] sm:$0xff] }
   0x3   :  { %93 = vmatpush.msra.mxu1 %v35_v1 }
   0x4   :  { %52 = vmatpush.msra.mxu0 %v34_v3 }
   0x5   :  { %7 = vsyncpa [#allocation3], 0  ;;  %v32_v5 = vld [vmem:[%s187_s1 + $0x20] sm:$0xff]  ;;  %94 = vmatpush.msra.mxu1 %v34_v3  ;;  %v31_v6 = vld [vmem:[%s187_s1 + $0x18] sm:$0xff]  ;;  %v14_v11 = vlaneseq  ;;  %vm36_vm0 = vcmask 523264   ;;  %v134_v14 = vmov 0.0  }
   0x6   :  { %53 = vmatpush.msra.mxu0 %v33_v4  ;;  %v13_v7 = vld [vmem:[%s186_s0 + $0x8] sm:$0xff]  ;;  %v30_v8 = vld [vmem:[%s187_s1 + $0x10] sm:$0xff]  ;;  %v28_v10 = vld [vmem:[%s187_s1] sm:$0xff]  ;;  %vm68_vm3 = vcmask 261120   ;;  %s135_s0 = smov [#allocation2]   ;;  %s77_s3 = sshll.u32 %s188_s2, 4  ;;  %s78_s3 = int_to_ptr.hbm [resolvable:$true] %s77_s3 }
   0x7   :  { %95 = vmatpush.msra.mxu1 %v33_v4  ;;  %v29_v9 = vld [vmem:[%s187_s1 + $0x8] sm:$0xff]  ;;  %v15_v12 = vand.u32 127, %v14_v11  ;;  %s75_s1 = sshll.u32 %s135_s0, 4  ;;  %s136_s4 = smov 128   ;;  %s76_s1 = int_to_ptr.vmem [resolvable:$true] %s75_s1 }
   0x8   :  { %54 = vmatpush.msra.mxu0 %v32_v5  ;;  %s137_s5 = smov 8  }
   0x9   :  { %96 = vmatpush.msra.mxu1 %v32_v5 }
   0xa   :  { %55 = vmatpush.msra.mxu0 %v31_v6  ;;  %20 = vperm.xlu0 %106, %v13_v7  }
   0xb   :  { %97 = vmatpush.msra.mxu1 %v31_v6 }
   0xc   :  { %56 = vmatpush.msra.mxu0 %v30_v8 }
   0xd   :  { %98 = vmatpush.msra.mxu1 %v30_v8 }
   0xe   :  { %57 = vmatpush.msra.mxu0 %v29_v9 }
   0xf   :  { %99 = vmatpush.msra.mxu1 %v29_v9 }
  0x10   :  { %58 = vmatpush.msra.mxu0 %v28_v10 }
  0x11   :  { %100 = vmatpush.msra.mxu1 %v28_v10 }
  0x74   :  { %v18_v13 = vpop.permute.xlu0 %17 }
  0x75   :  { %vm22_vm1 = vcmp.eq.s32.totalorder %v18_v13, %v15_v12 }
  0x76   :  { %v89_v15 = vsel %vm22_vm1, 1.0, %v134_v14 }
  0x77   :  { %91 = vmatmul.msk.f32.vlgmr.msra.gmra.mxu0 %vm36_vm0, %v89_v15 }
  0x7c   :  { %v21_v16 = vpop.permute.xlu0 %20 }
  0x7d   :  { %vm23_vm2 = vcmp.eq.s32.totalorder %v21_v16, %v15_v12 }
  0x7e   :  { %v90_v17 = vsel %vm23_vm2, 1.0, %v134_v14 }
  0x7f   :  { %92 = vmatmul.msk.f32.vlgmr.msra.gmra.mxu1 %vm36_vm0, %v90_v17 }
  0xf4   :  { %v60_v18 = vpop.f32.mrf.mxu0 }
  0xf5   :  { %v66_v19 = vmul.f32 5.656854, %v60_v18 }
  0xf7   :  { %69 = vst.msk [vmem:[#allocation2] sm:$0xff] %vm68_vm3, %v66_v19 }
  0xfc   :  { %v63_v20 = vpop.f32.mrf.mxu1 }
  0xfd   :  { %v67_v21 = vmul.f32 5.656854, %v63_v20 }
  0xff   :  { %70 = vst.msk [vmem:[#allocation2 + $0x8] sm:$0xff] %vm68_vm3, %v67_v21 }
 0x100   :  { %83 = dma.vmem_to_hbm [thread:$0]  %s76_s1, 256, %s78_s3, [#allocation3], %s136_s4, %s136_s4, %s137_s5  }
 0x101   :  { %131 = dma.done.wait [#allocation3], 256  }
 0x102   :  { %132 = vsyncadd [#allocation3], 4294967040 }
 0x103   :  { %88 = vsyncpa [#allocation3], 1 }

</bundles_post_ra>
